<compile_context>
chip_gen: v5e
topology: v5e:2x2
jax: 0.10.0
libtpu: 0.0.40
codegen_flags: <defaults>
</compile_context>

<pallas_src>
import functools

import jax
import jax.numpy as jnp
import numpy as np
from jax.experimental import pallas as pl
from jax.experimental.pallas import tpu as pltpu


def _disc_loss_kernel(emb_ref, lab_ref, out_ref,
                      sums_ref, counts_ref, c2_ref, lv_ref,
                      *, K, B, n_points,
                      delta_d, delta_v, alpha, beta, gamma):
    p = pl.program_id(1)                      # phase: 0 = accumulate, 1 = loss
    t = pl.program_id(2)                      # N tile
    nt = pl.num_programs(2)

    labels = lab_ref[0]                                        # (1, TN) int32
    kcol = jax.lax.broadcasted_iota(jnp.int32, (K, 1), 0)      # (K, 1)
    match = labels == kcol                                     # (K, TN) bool
    # padded points carry label -1 -> match is all-False -> they contribute 0.

    # ------------- phase 0, tile 0: init per-batch state ---------------------
    @pl.when(jnp.logical_and(p == 0, t == 0))
    def _():
        sums_ref[...] = jnp.zeros_like(sums_ref)
        counts_ref[...] = jnp.zeros_like(counts_ref)
        lv_ref[0] = jnp.float32(0.0)

    # ------------- phase 0: accumulate centroid sums + counts ----------------
    @pl.when(p == 0)
    def _():
        emb = emb_ref[0]                                        # (D, TN) bf16
        onehot = match.astype(emb.dtype)                        # (K, TN)
        dn = (((1,), (1,)), ((), ()))                           # contract over N
        sums_ref[...] += jax.lax.dot_general(
            emb, onehot, dn, preferred_element_type=jnp.float32)        # (D, K)
        ones_row = jnp.ones((1, emb.shape[1]), emb.dtype)
        counts_ref[...] += jax.lax.dot_general(
            ones_row, onehot, dn, preferred_element_type=jnp.float32)   # (1, K)

    # ------------- phase 1, tile 0: finalize centroids -----------------------
    @pl.when(jnp.logical_and(p == 1, t == 0))
    def _():
        cent = sums_ref[...] / jnp.maximum(counts_ref[...], 1.0)        # (D, K)
        sums_ref[...] = cent                     # reuse scratch as centroids
        c2_ref[...] = jnp.sum(cent * cent, axis=0, keepdims=True)       # (1, K)

    # ------------- phase 1: L_v (variance / pull term) -----------------------
    @pl.when(p == 1)
    def _():
        emb = emb_ref[0].astype(jnp.float32)                    # (D, TN)
        onehot = match.astype(jnp.float32)                      # (K, TN)
        cent = sums_ref[...]                                    # (D, K)
        scores = jax.lax.dot_general(                           # c_k . e_n
            cent, emb, (((0,), (0,)), ((), ())),
            preferred_element_type=jnp.float32)                 # (K, TN)
        score_g = jnp.sum(onehot * scores, axis=0, keepdims=True)       # (1, TN)
        c2_g = jax.lax.dot_general(                             # |c_label|^2
            c2_ref[...], onehot, (((1,), (0,)), ((), ())),
            preferred_element_type=jnp.float32)                 # (1, TN)
        e2 = jnp.sum(emb * emb, axis=0, keepdims=True)          # (1, TN)
        dev = jnp.sqrt(jnp.maximum(e2 - 2.0 * score_g + c2_g, 0.0))
        hinge = jnp.maximum(dev - delta_v, 0.0) ** 2
        lv_ref[0] += jnp.sum(hinge)

    # ------------- phase 1, last tile: L_d, L_r, write output ----------------
    @pl.when(jnp.logical_and(p == 1, t == nt - 1))
    def _():
        cent = sums_ref[...]                                    # (D, K)
        c2 = c2_ref[...]                                        # (1, K)

        # n = max(label) + 1  (labels assumed in [0, K), so the max label has
        # a nonzero count).
        kidx_row = jax.lax.broadcasted_iota(jnp.int32, (1, K), 1)
        n = jnp.max(jnp.where(counts_ref[...] > 0.0, kidx_row + 1, 0))
        n_f = n.astype(jnp.float32)

        # L_d: pairwise centroid distances via the Gram matrix.
        gram = jax.lax.dot_general(cent, cent, (((0,), (0,)), ((), ())),
                                   preferred_element_type=jnp.float32)  # (K, K)
        ii = jax.lax.broadcasted_iota(jnp.int32, (K, K), 0)
        jj = jax.lax.broadcasted_iota(jnp.int32, (K, K), 1)
        eye_f = (ii == jj).astype(jnp.float32)
        diag_col = jnp.sum(gram * eye_f, axis=1, keepdims=True)         # (K, 1)
        dist = jnp.sqrt(jnp.maximum(diag_col + c2 - 2.0 * gram, 0.0))   # (K, K)
        margin = (2.0 * delta_d) * (1.0 - eye_f)
        pair_valid = ((ii < n) & (jj < n)).astype(jnp.float32)
        hinge_d = (jnp.maximum(margin - dist, 0.0) ** 2) * pair_valid
        denom = jnp.maximum(n_f * (n_f - 1.0), 1.0)
        l_d = jnp.where(n > 1, jnp.sum(hinge_d) / denom, 0.0)

        # L_r: mean centroid norm over the first n instances.
        valid_row = (kidx_row < n).astype(jnp.float32)
        cnorm = jnp.sqrt(jnp.maximum(c2, 0.0))
        l_r = jnp.sum(cnorm * valid_row) / n_f

        l_v = lv_ref[0] * (1.0 / float(n_points))
        contrib = alpha * l_v + (beta / B) * l_d + (gamma / B) * l_r
        out_ref[...] = jnp.full(out_ref.shape, contrib, dtype=jnp.float32)


def discriminative_loss(embedded, instance_mask, *, num_instances,
                        delta_d, delta_v, alpha=1.0, beta=1.0, gamma=0.001,
                        n_tile=2048, compute_dtype=jnp.bfloat16):
    """Pallas implementation of DiscriminativeLoss.forward.

    embedded:      (B, N, D) float
    instance_mask: (B, N) integer labels in [0, num_instances)
    """
    embedded = jnp.asarray(embedded)
    B, N, D = embedded.shape
    K = int(num_instances)

    # N on the lane axis; stream embedded in a narrow dtype (MXU accumulates
    # in f32; elementwise L_v math is upcast to f32 in-kernel).
    emb_t = jnp.transpose(embedded.astype(compute_dtype), (0, 2, 1))   # (B, D, N)
    labels = jnp.asarray(instance_mask, jnp.int32).reshape(B, 1, N)

    # Pad N to a multiple of the lane tile; padded labels (-1) never match any
    # instance id so they contribute exactly 0 to every term.
    tn = max(128, (int(n_tile) // 128) * 128)
    tn = int(min(tn, pl.cdiv(N, 128) * 128))
    n_pad = int(pl.cdiv(N, tn) * tn)
    if n_pad != N:
        emb_t = jnp.pad(emb_t, ((0, 0), (0, 0), (0, n_pad - N)))
        labels = jnp.pad(labels, ((0, 0), (0, 0), (0, n_pad - N)),
                         constant_values=-1)
    num_tiles = n_pad // tn

    kernel = functools.partial(
        _disc_loss_kernel, K=K, B=int(B), n_points=int(N),
        delta_d=float(delta_d), delta_v=float(delta_v),
        alpha=float(alpha), beta=float(beta), gamma=float(gamma))

    out = pl.pallas_call(
        kernel,
        out_shape=jax.ShapeDtypeStruct((B, 1, 128), jnp.float32),
        grid_spec=pltpu.PrefetchScalarGridSpec(
            num_scalar_prefetch=0,
            grid=(B, 2, num_tiles),          # (batch, phase, N tiles)
            in_specs=[
                pl.BlockSpec((1, D, tn), lambda b, p, t: (b, 0, t)),
                pl.BlockSpec((1, 1, tn), lambda b, p, t: (b, 0, t)),
            ],
            out_specs=pl.BlockSpec((1, 1, 128), lambda b, p, t: (b, 0, 0)),
            scratch_shapes=[
                pltpu.VMEM((D, K), jnp.float32),    # sums -> centroids
                pltpu.VMEM((1, K), jnp.float32),    # per-instance counts
                pltpu.VMEM((1, K), jnp.float32),    # |c_k|^2
                pltpu.SMEM((1,), jnp.float32),      # L_v partial sum
            ]),
        compiler_params=pltpu.CompilerParams(
            dimension_semantics=("parallel", "arbitrary", "arbitrary"),
            vmem_limit_bytes=32 * 1024 * 1024),
    )(emb_t, labels)
    # per-batch partial losses -> total
    return jnp.sum(out[:, 0, 0])


def _reference_loss(embedded, instance_mask, num_instances,
                    delta_d, delta_v, alpha, beta, gamma):
    """Pure-JAX reference mirroring the PyTorch module semantics."""
    embedded = jnp.asarray(embedded, jnp.float32)
    B, N, D = embedded.shape
    K = num_instances
    lv_sum, ld_sum, lr_sum = 0.0, 0.0, 0.0
    for i in range(B):
        emb = embedded[i]
        lab = jnp.asarray(instance_mask[i], jnp.int32)
        onehot = (lab[:, None] == jnp.arange(K)[None, :]).astype(jnp.float32)
        counts = onehot.sum(0)
        cent = (onehot.T @ emb) / jnp.maximum(counts, 1.0)[:, None]
        n = int(jnp.max(lab)) + 1
        # L_v
        dev = jnp.linalg.norm(emb - cent[lab], axis=1)
        lv_sum += jnp.mean(jnp.maximum(dev - delta_v, 0.0) ** 2)
        # L_d
        if n > 1:
            mu = cent[:n]
            dm = mu[:, None, :] - mu[None, :, :]
            nm = jnp.linalg.norm(dm, axis=2)
            margin = 2.0 * delta_d * (1.0 - jnp.eye(n))
            ld_sum += jnp.sum(jnp.maximum(margin - nm, 0.0) ** 2) / (n * (n - 1))
        # L_r
        lr_sum += jnp.mean(jnp.linalg.norm(cent[:n], axis=1))
    return alpha * lv_sum + beta * ld_sum / B + gamma * lr_sum / B


if __name__ == "__main__":
    # Hyperparameters (module __init__ has no learnable weights).
    delta_d, delta_v = 1.5, 0.5
    alpha, beta, gamma = 1.0, 1.0, 0.001

    B, N, D, K = 2, 256, 16, 8

    key = jax.random.PRNGKey(0)
    k_emb, k_lab = jax.random.split(key)
    embedded = jax.random.normal(k_emb, (B, N, D), dtype=jnp.float32)
    # Pre-round to bf16 values so the f32 reference sees exactly the data the
    # kernel streams (bf16 streaming is the perf path on v5e/v6e).
    embedded = embedded.astype(jnp.bfloat16).astype(jnp.float32)
    instance_mask = jax.random.randint(k_lab, (B, N), 0, K, dtype=jnp.int32)
    # Ensure every instance id 0..K-1 appears (torch.stack of scatter_mean
    # outputs implicitly requires the same max label across the batch).
    instance_mask = instance_mask.at[:, :K].set(jnp.arange(K, dtype=jnp.int32))

    loss = discriminative_loss(
        embedded, instance_mask, num_instances=K,
        delta_d=delta_d, delta_v=delta_v, alpha=alpha, beta=beta, gamma=gamma,
        n_tile=128)   # small tile so the two-phase N pipeline is exercised
    loss = jax.block_until_ready(loss)

    ref = _reference_loss(embedded, instance_mask, K,
                          delta_d, delta_v, alpha, beta, gamma)
    np.testing.assert_allclose(np.asarray(loss), np.asarray(ref),
                               rtol=5e-4, atol=5e-4)
    print("KERNEL_OK")
</pallas_src>

<mosaic_0001>
module attributes {stable_mosaic.version = 11 : i64} {
  func.func @_disc_loss_kernel(%arg0: i32, %arg1: i32, %arg2: i32, %arg3: memref<1x16x128xbf16, #tpu.memory_space<vmem>>, %arg4: memref<1x1x128xi32, #tpu.memory_space<vmem>>, %arg5: memref<1x1x128xf32, #tpu.memory_space<vmem>>, %arg6: memref<16x8xf32, #tpu.memory_space<vmem>>, %arg7: memref<1x8xf32, #tpu.memory_space<vmem>>, %arg8: memref<1x8xf32, #tpu.memory_space<vmem>>, %arg9: memref<1xf32, #tpu.memory_space<smem>>) attributes {dimension_semantics = [#tpu.dimension_semantics<parallel>, #tpu.dimension_semantics<arbitrary>, #tpu.dimension_semantics<arbitrary>], iteration_bounds = array<i64: 2, 2, 2>, scalar_prefetch = 0 : i64, scratch_operands = 4 : i64, tpu.core_type = #tpu.core_type<tc>, window_params = [{transform_indices = @transform_0, window_bounds = array<i64: 1, 16, 128>}, {transform_indices = @transform_1, window_bounds = array<i64: 1, 1, 128>}, {transform_indices = @transform_2, window_bounds = array<i64: 1, 1, 128>}]} {
    %c0 = arith.constant 0 : index
    %c0_0 = arith.constant 0 : index
    %c0_1 = arith.constant 0 : index
    %0 = vector.load %arg4[%c0, %c0_0, %c0_1] : memref<1x1x128xi32, #tpu.memory_space<vmem>>, vector<1x1x128xi32>
    %1 = vector.shape_cast %0 : vector<1x1x128xi32> to vector<1x128xi32>
    %2 = tpu.iota {dimensions = array<i32: 0>} : vector<8x1xi32>
    %3 = vector.broadcast %1 : vector<1x128xi32> to vector<8x128xi32>
    %4 = vector.broadcast %2 : vector<8x1xi32> to vector<8x128xi32>
    %5 = arith.cmpi eq, %3, %4 : vector<8x128xi32>
    %c0_i32 = arith.constant 0 : i32
    %6 = arith.cmpi eq, %arg1, %c0_i32 : i32
    %c0_i32_2 = arith.constant 0 : i32
    %7 = arith.cmpi eq, %arg2, %c0_i32_2 : i32
    %8 = arith.andi %6, %7 : i1
    %9 = arith.extui %8 : i1 to i32
    %c0_i32_3 = arith.constant 0 : i32
    %10 = arith.cmpi ne, %9, %c0_i32_3 : i32
    scf.if %10 {
      %cst = arith.constant 0.000000e+00 : f32
      %27 = vector.broadcast %cst : f32 to vector<16x8xf32>
      %c0_13 = arith.constant 0 : index
      %c0_14 = arith.constant 0 : index
      %28 = vector.load %arg6[%c0_13, %c0_14] : memref<16x8xf32, #tpu.memory_space<vmem>>, vector<16x8xf32>
      tpu.vector_store %arg6[%c0_13, %c0_14], %27 {strides = array<i32>} : memref<16x8xf32, #tpu.memory_space<vmem>>, vector<16x8xf32>,
      %cst_15 = arith.constant 0.000000e+00 : f32
      %29 = vector.broadcast %cst_15 : f32 to vector<1x8xf32>
      %c0_16 = arith.constant 0 : index
      %c0_17 = arith.constant 0 : index
      %30 = vector.load %arg7[%c0_16, %c0_17] : memref<1x8xf32, #tpu.memory_space<vmem>>, vector<1x8xf32>
      tpu.vector_store %arg7[%c0_16, %c0_17], %29 {strides = array<i32>} : memref<1x8xf32, #tpu.memory_space<vmem>>, vector<1x8xf32>,
      %cst_18 = arith.constant 0.000000e+00 : f32
      %c0_19 = arith.constant 0 : index
      %31 = memref.load %arg9[%c0_19] : memref<1xf32, #tpu.memory_space<smem>>
      memref.store %cst_18, %arg9[%c0_19] : memref<1xf32, #tpu.memory_space<smem>>
    } else {
    }
    %c0_i32_4 = arith.constant 0 : i32
    %11 = arith.cmpi eq, %arg1, %c0_i32_4 : i32
    %12 = arith.extui %11 : i1 to i32
    %c0_i32_5 = arith.constant 0 : i32
    %13 = arith.cmpi ne, %12, %c0_i32_5 : i32
    scf.if %13 {
      %c0_13 = arith.constant 0 : index
      %c0_14 = arith.constant 0 : index
      %c0_15 = arith.constant 0 : index
      %27 = vector.load %arg3[%c0_13, %c0_14, %c0_15] : memref<1x16x128xbf16, #tpu.memory_space<vmem>>, vector<1x16x128xbf16>
      %28 = vector.shape_cast %27 : vector<1x16x128xbf16> to vector<16x128xbf16>
      %29 = arith.extui %5 : vector<8x128xi1> to vector<8x128xi32>
      %30 = arith.sitofp %29 : vector<8x128xi32> to vector<8x128xf32>
      %31 = arith.truncf %30 : vector<8x128xf32> to vector<8x128xbf16>
      %c0_16 = arith.constant 0 : index
      %c0_17 = arith.constant 0 : index
      %32 = vector.load %arg6[%c0_16, %c0_17] : memref<16x8xf32, #tpu.memory_space<vmem>>, vector<16x8xf32>
      %cst = arith.constant dense<0.000000e+00> : vector<16x8xf32>
      %33 = tpu.matmul %28, %31, %cst {dimension_numbers = #tpu.dot_dimension_numbers<[1], [1], [0], [0], [0, 0, 1, 0], [], []>} : vector<16x128xbf16>, vector<8x128xbf16>, vector<16x8xf32> -> vector<16x8xf32>
      %34 = arith.addf %32, %33 : vector<16x8xf32>
      %c0_18 = arith.constant 0 : index
      %c0_19 = arith.constant 0 : index
      %35 = vector.load %arg6[%c0_18, %c0_19] : memref<16x8xf32, #tpu.memory_space<vmem>>, vector<16x8xf32>
      tpu.vector_store %arg6[%c0_18, %c0_19], %34 {strides = array<i32>} : memref<16x8xf32, #tpu.memory_space<vmem>>, vector<16x8xf32>,
      %cst_20 = arith.constant 1.000000e+00 : bf16
      %36 = vector.broadcast %cst_20 : bf16 to vector<1x128xbf16>
      %c0_21 = arith.constant 0 : index
      %c0_22 = arith.constant 0 : index
      %37 = vector.load %arg7[%c0_21, %c0_22] : memref<1x8xf32, #tpu.memory_space<vmem>>, vector<1x8xf32>
      %cst_23 = arith.constant dense<0.000000e+00> : vector<1x8xf32>
      %38 = tpu.matmul %36, %31, %cst_23 {dimension_numbers = #tpu.dot_dimension_numbers<[1], [1], [0], [0], [0, 0, 1, 0], [], []>} : vector<1x128xbf16>, vector<8x128xbf16>, vector<1x8xf32> -> vector<1x8xf32>
      %39 = arith.addf %37, %38 : vector<1x8xf32>
      %c0_24 = arith.constant 0 : index
      %c0_25 = arith.constant 0 : index
      %40 = vector.load %arg7[%c0_24, %c0_25] : memref<1x8xf32, #tpu.memory_space<vmem>>, vector<1x8xf32>
      tpu.vector_store %arg7[%c0_24, %c0_25], %39 {strides = array<i32>} : memref<1x8xf32, #tpu.memory_space<vmem>>, vector<1x8xf32>,
    } else {
    }
    %c1_i32 = arith.constant 1 : i32
    %14 = arith.cmpi eq, %arg1, %c1_i32 : i32
    %c0_i32_6 = arith.constant 0 : i32
    %15 = arith.cmpi eq, %arg2, %c0_i32_6 : i32
    %16 = arith.andi %14, %15 : i1
    %17 = arith.extui %16 : i1 to i32
    %c0_i32_7 = arith.constant 0 : i32
    %18 = arith.cmpi ne, %17, %c0_i32_7 : i32
    scf.if %18 {
      %c0_13 = arith.constant 0 : index
      %c0_14 = arith.constant 0 : index
      %27 = vector.load %arg6[%c0_13, %c0_14] : memref<16x8xf32, #tpu.memory_space<vmem>>, vector<16x8xf32>
      %c0_15 = arith.constant 0 : index
      %c0_16 = arith.constant 0 : index
      %28 = vector.load %arg7[%c0_15, %c0_16] : memref<1x8xf32, #tpu.memory_space<vmem>>, vector<1x8xf32>
      %cst = arith.constant 1.000000e+00 : f32
      %29 = vector.broadcast %cst : f32 to vector<1x8xf32>
      %30 = arith.maximumf %28, %29 : vector<1x8xf32>
      %31 = vector.broadcast %30 : vector<1x8xf32> to vector<16x8xf32>
      %32 = arith.divf %27, %31 : vector<16x8xf32>
      %c0_17 = arith.constant 0 : index
      %c0_18 = arith.constant 0 : index
      %33 = vector.load %arg6[%c0_17, %c0_18] : memref<16x8xf32, #tpu.memory_space<vmem>>, vector<16x8xf32>
      tpu.vector_store %arg6[%c0_17, %c0_18], %32 {strides = array<i32>} : memref<16x8xf32, #tpu.memory_space<vmem>>, vector<16x8xf32>,
      %34 = arith.mulf %32, %32 : vector<16x8xf32>
      %cst_19 = arith.constant dense<0.000000e+00> : vector<8xf32>
      %35 = vector.multi_reduction <add>, %34, %cst_19 [0] : vector<16x8xf32> to vector<8xf32>
      %36 = vector.shape_cast %35 : vector<8xf32> to vector<1x8xf32>
      %c0_20 = arith.constant 0 : index
      %c0_21 = arith.constant 0 : index
      %37 = vector.load %arg8[%c0_20, %c0_21] : memref<1x8xf32, #tpu.memory_space<vmem>>, vector<1x8xf32>
      tpu.vector_store %arg8[%c0_20, %c0_21], %36 {strides = array<i32>} : memref<1x8xf32, #tpu.memory_space<vmem>>, vector<1x8xf32>,
    } else {
    }
    %c1_i32_8 = arith.constant 1 : i32
    %19 = arith.cmpi eq, %arg1, %c1_i32_8 : i32
    %20 = arith.extui %19 : i1 to i32
    %c0_i32_9 = arith.constant 0 : i32
    %21 = arith.cmpi ne, %20, %c0_i32_9 : i32
    scf.if %21 {
      %c0_13 = arith.constant 0 : index
      %c0_14 = arith.constant 0 : index
      %c0_15 = arith.constant 0 : index
      %27 = vector.load %arg3[%c0_13, %c0_14, %c0_15] : memref<1x16x128xbf16, #tpu.memory_space<vmem>>, vector<1x16x128xbf16>
      %28 = vector.shape_cast %27 : vector<1x16x128xbf16> to vector<16x128xbf16>
      %29 = arith.extf %28 : vector<16x128xbf16> to vector<16x128xf32>
      %30 = arith.extui %5 : vector<8x128xi1> to vector<8x128xi32>
      %31 = arith.sitofp %30 : vector<8x128xi32> to vector<8x128xf32>
      %c0_16 = arith.constant 0 : index
      %c0_17 = arith.constant 0 : index
      %32 = vector.load %arg6[%c0_16, %c0_17] : memref<16x8xf32, #tpu.memory_space<vmem>>, vector<16x8xf32>
      %cst = arith.constant dense<0.000000e+00> : vector<8x128xf32>
      %33 = tpu.matmul %32, %29, %cst {dimension_numbers = #tpu.dot_dimension_numbers<[0], [0], [1], [1], [0, 1, 1, 1], [], []>} : vector<16x8xf32>, vector<16x128xf32>, vector<8x128xf32> -> vector<8x128xf32>
      %34 = arith.mulf %31, %33 : vector<8x128xf32>
      %cst_18 = arith.constant dense<0.000000e+00> : vector<128xf32>
      %35 = vector.multi_reduction <add>, %34, %cst_18 [0] : vector<8x128xf32> to vector<128xf32>
      %36 = vector.shape_cast %35 : vector<128xf32> to vector<1x128xf32>
      %c0_19 = arith.constant 0 : index
      %c0_20 = arith.constant 0 : index
      %37 = vector.load %arg8[%c0_19, %c0_20] : memref<1x8xf32, #tpu.memory_space<vmem>>, vector<1x8xf32>
      %cst_21 = arith.constant dense<0.000000e+00> : vector<1x128xf32>
      %38 = tpu.matmul %37, %31, %cst_21 {dimension_numbers = #tpu.dot_dimension_numbers<[1], [0], [0], [1], [0, 0, 1, 1], [], []>} : vector<1x8xf32>, vector<8x128xf32>, vector<1x128xf32> -> vector<1x128xf32>
      %39 = arith.mulf %29, %29 : vector<16x128xf32>
      %cst_22 = arith.constant dense<0.000000e+00> : vector<128xf32>
      %40 = vector.multi_reduction <add>, %39, %cst_22 [0] : vector<16x128xf32> to vector<128xf32>
      %41 = vector.shape_cast %40 : vector<128xf32> to vector<1x128xf32>
      %cst_23 = arith.constant 2.000000e+00 : f32
      %42 = vector.broadcast %cst_23 : f32 to vector<1x128xf32>
      %43 = arith.mulf %42, %36 : vector<1x128xf32>
      %44 = arith.subf %41, %43 : vector<1x128xf32>
      %45 = arith.addf %44, %38 : vector<1x128xf32>
      %cst_24 = arith.constant 0.000000e+00 : f32
      %46 = vector.broadcast %cst_24 : f32 to vector<1x128xf32>
      %47 = arith.maximumf %45, %46 : vector<1x128xf32>
      %48 = math.sqrt %47 : vector<1x128xf32>
      %cst_25 = arith.constant 5.000000e-01 : f32
      %49 = vector.broadcast %cst_25 : f32 to vector<1x128xf32>
      %50 = arith.subf %48, %49 : vector<1x128xf32>
      %cst_26 = arith.constant 0.000000e+00 : f32
      %51 = vector.broadcast %cst_26 : f32 to vector<1x128xf32>
      %52 = arith.maximumf %50, %51 : vector<1x128xf32>
      %53 = arith.mulf %52, %52 : vector<1x128xf32>
      %c0_27 = arith.constant 0 : index
      %54 = memref.load %arg9[%c0_27] : memref<1xf32, #tpu.memory_space<smem>>
      %55 = vector.shape_cast %53 : vector<1x128xf32> to vector<1x1x128xf32>
      %cst_28 = arith.constant dense<0.000000e+00> : vector<1xf32>
      %56 = vector.multi_reduction <add>, %55, %cst_28 [1, 2] : vector<1x1x128xf32> to vector<1xf32>
      %57 = vector.shape_cast %56 : vector<1xf32> to vector<1x1x1xf32>
      %58 = vector.extract %57[0, 0, 0] : f32 from vector<1x1x1xf32>
      %59 = arith.addf %54, %58 : f32
      %c0_29 = arith.constant 0 : index
      %60 = memref.load %arg9[%c0_29] : memref<1xf32, #tpu.memory_space<smem>>
      memref.store %59, %arg9[%c0_29] : memref<1xf32, #tpu.memory_space<smem>>
    } else {
    }
    %c1_i32_10 = arith.constant 1 : i32
    %22 = arith.cmpi eq, %arg1, %c1_i32_10 : i32
    %c1_i32_11 = arith.constant 1 : i32
    %23 = arith.cmpi eq, %arg2, %c1_i32_11 : i32
    %24 = arith.andi %22, %23 : i1
    %25 = arith.extui %24 : i1 to i32
    %c0_i32_12 = arith.constant 0 : i32
    %26 = arith.cmpi ne, %25, %c0_i32_12 : i32
    scf.if %26 {
      %c0_13 = arith.constant 0 : index
      %c0_14 = arith.constant 0 : index
      %27 = vector.load %arg6[%c0_13, %c0_14] : memref<16x8xf32, #tpu.memory_space<vmem>>, vector<16x8xf32>
      %c0_15 = arith.constant 0 : index
      %c0_16 = arith.constant 0 : index
      %28 = vector.load %arg8[%c0_15, %c0_16] : memref<1x8xf32, #tpu.memory_space<vmem>>, vector<1x8xf32>
      %29 = tpu.iota {dimensions = array<i32: 1>} : vector<1x8xi32>
      %c0_17 = arith.constant 0 : index
      %c0_18 = arith.constant 0 : index
      %30 = vector.load %arg7[%c0_17, %c0_18] : memref<1x8xf32, #tpu.memory_space<vmem>>, vector<1x8xf32>
      %cst = arith.constant 0.000000e+00 : f32
      %31 = vector.broadcast %cst : f32 to vector<1x8xf32>
      %32 = arith.cmpf ogt, %30, %31 : vector<1x8xf32>
      %c1_i32_19 = arith.constant 1 : i32
      %33 = vector.broadcast %c1_i32_19 : i32 to vector<1x8xi32>
      %34 = arith.addi %29, %33 : vector<1x8xi32>
      %c0_i32_20 = arith.constant 0 : i32
      %35 = vector.broadcast %c0_i32_20 : i32 to vector<1x8xi32>
      %36 = arith.select %32, %34, %35 : vector<1x8xi1>, vector<1x8xi32>
      %37 = vector.shape_cast %36 : vector<1x8xi32> to vector<1x1x8xi32>
      %cst_21 = arith.constant dense<-2147483648> : vector<1xi32>
      %38 = vector.multi_reduction <maxsi>, %37, %cst_21 [1, 2] : vector<1x1x8xi32> to vector<1xi32>
      %39 = vector.shape_cast %38 : vector<1xi32> to vector<1x1x1xi32>
      %40 = vector.extract %39[0, 0, 0] : i32 from vector<1x1x1xi32>
      %41 = arith.sitofp %40 : i32 to f32
      %cst_22 = arith.constant dense<0.000000e+00> : vector<8x8xf32>
      %42 = tpu.matmul %27, %27, %cst_22 {dimension_numbers = #tpu.dot_dimension_numbers<[0], [0], [1], [1], [0, 1, 1, 1], [], []>} : vector<16x8xf32>, vector<16x8xf32>, vector<8x8xf32> -> vector<8x8xf32>
      %43 = tpu.iota {dimensions = array<i32: 0>} : vector<8x8xi32>
      %44 = tpu.iota {dimensions = array<i32: 1>} : vector<8x8xi32>
      %45 = arith.cmpi eq, %43, %44 : vector<8x8xi32>
      %46 = arith.extui %45 : vector<8x8xi1> to vector<8x8xi32>
      %47 = arith.sitofp %46 : vector<8x8xi32> to vector<8x8xf32>
      %48 = arith.mulf %42, %47 : vector<8x8xf32>
      %cst_23 = arith.constant dense<0.000000e+00> : vector<8xf32>
      %49 = vector.multi_reduction <add>, %48, %cst_23 [1] : vector<8x8xf32> to vector<8xf32>
      %50 = vector.shape_cast %49 : vector<8xf32> to vector<8x1xf32>
      %51 = vector.broadcast %50 : vector<8x1xf32> to vector<8x8xf32>
      %52 = vector.broadcast %28 : vector<1x8xf32> to vector<8x8xf32>
      %53 = arith.addf %51, %52 : vector<8x8xf32>
      %cst_24 = arith.constant 2.000000e+00 : f32
      %54 = vector.broadcast %cst_24 : f32 to vector<8x8xf32>
      %55 = arith.mulf %54, %42 : vector<8x8xf32>
      %56 = arith.subf %53, %55 : vector<8x8xf32>
      %cst_25 = arith.constant 0.000000e+00 : f32
      %57 = vector.broadcast %cst_25 : f32 to vector<8x8xf32>
      %58 = arith.maximumf %56, %57 : vector<8x8xf32>
      %59 = math.sqrt %58 : vector<8x8xf32>
      %cst_26 = arith.constant 1.000000e+00 : f32
      %60 = vector.broadcast %cst_26 : f32 to vector<8x8xf32>
      %61 = arith.subf %60, %47 : vector<8x8xf32>
      %cst_27 = arith.constant 3.000000e+00 : f32
      %62 = vector.broadcast %cst_27 : f32 to vector<8x8xf32>
      %63 = arith.mulf %62, %61 : vector<8x8xf32>
      %64 = vector.broadcast %40 : i32 to vector<8x8xi32>
      %65 = arith.cmpi slt, %43, %64 : vector<8x8xi32>
      %66 = vector.broadcast %40 : i32 to vector<8x8xi32>
      %67 = arith.cmpi slt, %44, %66 : vector<8x8xi32>
      %68 = arith.andi %65, %67 : vector<8x8xi1>
      %69 = arith.extui %68 : vector<8x8xi1> to vector<8x8xi32>
      %70 = arith.sitofp %69 : vector<8x8xi32> to vector<8x8xf32>
      %71 = arith.subf %63, %59 : vector<8x8xf32>
      %cst_28 = arith.constant 0.000000e+00 : f32
      %72 = vector.broadcast %cst_28 : f32 to vector<8x8xf32>
      %73 = arith.maximumf %71, %72 : vector<8x8xf32>
      %74 = arith.mulf %73, %73 : vector<8x8xf32>
      %75 = arith.mulf %74, %70 : vector<8x8xf32>
      %cst_29 = arith.constant 1.000000e+00 : f32
      %76 = arith.subf %41, %cst_29 : f32
      %77 = arith.mulf %41, %76 : f32
      %cst_30 = arith.constant 1.000000e+00 : f32
      %78 = arith.maximumf %77, %cst_30 : f32
      %c1_i32_31 = arith.constant 1 : i32
      %79 = arith.cmpi sgt, %40, %c1_i32_31 : i32
      %80 = vector.shape_cast %75 : vector<8x8xf32> to vector<1x8x8xf32>
      %cst_32 = arith.constant dense<0.000000e+00> : vector<1xf32>
      %81 = vector.multi_reduction <add>, %80, %cst_32 [1, 2] : vector<1x8x8xf32> to vector<1xf32>
      %82 = vector.shape_cast %81 : vector<1xf32> to vector<1x1x1xf32>
      %83 = vector.extract %82[0, 0, 0] : f32 from vector<1x1x1xf32>
      %84 = arith.divf %83, %78 : f32
      %cst_33 = arith.constant 0.000000e+00 : f32
      %85 = arith.select %79, %84, %cst_33 : f32
      %86 = vector.broadcast %40 : i32 to vector<1x8xi32>
      %87 = arith.cmpi slt, %29, %86 : vector<1x8xi32>
      %88 = arith.extui %87 : vector<1x8xi1> to vector<1x8xi32>
      %89 = arith.sitofp %88 : vector<1x8xi32> to vector<1x8xf32>
      %cst_34 = arith.constant 0.000000e+00 : f32
      %90 = vector.broadcast %cst_34 : f32 to vector<1x8xf32>
      %91 = arith.maximumf %28, %90 : vector<1x8xf32>
      %92 = math.sqrt %91 : vector<1x8xf32>
      %93 = arith.mulf %92, %89 : vector<1x8xf32>
      %94 = vector.shape_cast %93 : vector<1x8xf32> to vector<1x1x8xf32>
      %cst_35 = arith.constant dense<0.000000e+00> : vector<1xf32>
      %95 = vector.multi_reduction <add>, %94, %cst_35 [1, 2] : vector<1x1x8xf32> to vector<1xf32>
      %96 = vector.shape_cast %95 : vector<1xf32> to vector<1x1x1xf32>
      %97 = vector.extract %96[0, 0, 0] : f32 from vector<1x1x1xf32>
      %98 = arith.divf %97, %41 : f32
      %c0_36 = arith.constant 0 : index
      %99 = memref.load %arg9[%c0_36] : memref<1xf32, #tpu.memory_space<smem>>
      %cst_37 = arith.constant 3.906250e-03 : f32
      %100 = arith.mulf %99, %cst_37 : f32
      %cst_38 = arith.constant 1.000000e+00 : f32
      %101 = arith.mulf %cst_38, %100 : f32
      %cst_39 = arith.constant 5.000000e-01 : f32
      %102 = arith.mulf %cst_39, %85 : f32
      %103 = arith.addf %101, %102 : f32
      %cst_40 = arith.constant 5.000000e-04 : f32
      %104 = arith.mulf %cst_40, %98 : f32
      %105 = arith.addf %103, %104 : f32
      %106 = vector.broadcast %105 : f32 to vector<1x1x128xf32>
      %c0_41 = arith.constant 0 : index
      %c0_42 = arith.constant 0 : index
      %c0_43 = arith.constant 0 : index
      %107 = vector.load %arg5[%c0_41, %c0_42, %c0_43] : memref<1x1x128xf32, #tpu.memory_space<vmem>>, vector<1x1x128xf32>
      tpu.vector_store %arg5[%c0_41, %c0_42, %c0_43], %106 {strides = array<i32>} : memref<1x1x128xf32, #tpu.memory_space<vmem>>, vector<1x1x128xf32>,
    } else {
    }
    return
  }
  func.func @transform_0(%arg0: i32, %arg1: i32, %arg2: i32) -> (i32, i32, i32) {
    %c0_i32 = arith.constant 0 : i32
    %c0_i32_0 = arith.constant 0 : i32
    return %arg0, %c0_i32, %arg2 : i32, i32, i32
  }
  func.func @transform_1(%arg0: i32, %arg1: i32, %arg2: i32) -> (i32, i32, i32) {
    %c0_i32 = arith.constant 0 : i32
    %c0_i32_0 = arith.constant 0 : i32
    return %arg0, %c0_i32, %arg2 : i32, i32, i32
  }
  func.func @transform_2(%arg0: i32, %arg1: i32, %arg2: i32) -> (i32, i32, i32) {
    %c0_i32 = arith.constant 0 : i32
    %c0_i32_0 = arith.constant 0 : i32
    %c0_i32_1 = arith.constant 0 : i32
    return %arg0, %c0_i32, %c0_i32_0 : i32, i32, i32
  }
}

</mosaic_0001>

<bundles_post_ra>
// kernel: tpu_custom_call.1
= control target key start
LH: loop header
LB: loop body
LE: loop exit
PB: predicated region body
PF: predicated region fallthrough
CT: control target
= control target key end

     0   :  { %s1523_s0 = inlined_call_operand.hbm [shape: bf16[2,16,256], index: 0, kind: input, shape index: {}]   ;;  %s1524_s1 = inlined_call_operand.hbm [shape: s32[2,1,256], index: 1, kind: input, shape index: {}]   ;;  %s1525_s2 = inlined_call_operand.hbm [shape: f32[2,1,128], index: 2, kind: output, shape index: {}]  }
   0x1   :  { %1531 = sst [smem:[#allocation23_spill]] %s1523_s0 }
   0x2   :  { %7 = vsyncpa [#allocation7], 0 }
   0x3   :  { %9 = vsyncpa [#allocation7 + $0x1], 0 }
   0x4   :  { %10 = vsyncpa [#allocation10], 0 }
   0x5   :  { %12 = vsyncpa [#allocation10 + $0x1], 0 }
   0x6   :  { %13 = vsyncpa [#allocation8], 0 }
   0x7   :  { %15 = vsyncpa [#allocation8 + $0x1], 0  ;;  %s1248_s9 = smov 0   ;;  %s1250_s10 = smov 0  }
   0x8   :  { %s1252_s11 = smov 0   ;;  %s1254_s12 = smov 0  }
   0x9   :  { %s1256_s13 = smov 0   ;;  %s1258_s14 = smov 0  }
   0xa   :  { %s1260_s15 = smov 0   ;;  %s1262_s16 = smov 0  }
   0xb   :  { %s1264_s17 = smov 0   ;;  %s1266_s18 = smov 0  }
   0xc   :  { %s1268_s19 = smov 0   ;;  %s1270_s20 = smov 0  }
   0xd   :  { %s1272_s21 = smov 0  }
   0xe LB: > { %1532 = sst [smem:[#allocation15_spill]] %s1180_s11  ;;  %s820_s22 = sadd.s32 4294967295, %s1220_s21   ;;  %s1220_s21 = sphi %s1272_s21, %s21_s21   ;;  %s1216_s20 = sphi %s1270_s20, %s1565_s20   ;;  %s1212_s19 = sphi %s1268_s19, %s1564_s19   ;;  %s1208_s18 = sphi %s1266_s18, %s1563_s18   ;;  %s1204_s17 = sphi %s1264_s17, %s1562_s17   ;;  %s1200_s16 = sphi %s1262_s16, %s1551_s16   ;;  %s1196_s15 = sphi %s1260_s15, %s1561_s15   ;;  %s1192_s14 = sphi %s1258_s14, %s1560_s14   ;;  %s1188_s13 = sphi %s1256_s13, %s1559_s13   ;;  %s1184_s12 = sphi %s1254_s12, %s1558_s12   ;;  %s1180_s11 = sphi %s1252_s11, %s1548_s11   ;;  %s1176_s10 = sphi %s1250_s10, %s1557_s10   ;;  %s1172_s9 = sphi %s1248_s9, %s1556_s9  }
   0xf   : > { %1533 = sst [smem:[#allocation16_spill]] %s1192_s14  ;;  %s821_s23 = sadd.s32 4294967294, %s1220_s21  }
  0x10   : > { %1534 = sst [smem:[#allocation17_spill]] %s1212_s19  ;;  %s33_s24 = sadd.s32 1, %s1208_s18 }
  0x11   : > { %s36_s25 = sadd.s32 1, %s1212_s19  ;;  %p34_p0 = scmp.ge.s32.totalorder %s33_s24, 2 }
  0x12   : > { %s40_s26 = sadd.s32 1, %s1216_s20  ;;  %s49_s27 = sadd.s32 1, %s1192_s14 }
  0x13   : > { %p56_p1 = scmp.ne.s32.totalorder %s1192_s14, %s1188_s13  ;;  %s1567_s24 = smov (%p34_p0, %s33_s24), 0 }
  0x14   : > { %1535 = sst [smem:[#allocation18_spill]] %s1567_s24  ;;  %s1569_s25 = smov (!%p34_p0, %s36_s25), %s1212_s19 }
  0x15   : > { %s45_s28 = ssub.s32 %s1208_s18, %s1567_s24  ;;  %p57_p2 = scmp.eq.s32.totalorder %s1220_s21, 0 }
  0x16   : > { %p38_p3 = scmp.ge.s32.totalorder %s1569_s25, 2  ;;  %p62_p4 = scmp.ne.s32.totalorder %s1188_s13, %s1184_s12 }
  0x17   : > { %p1326_p5 = por %p57_p2, %p56_p1  ;;  %p63_p6 = scmp.eq.s32.totalorder %s820_s22, 0 }
  0x18   : > { %s1571_s25 = smov (%p38_p3, %s1569_s25), 0  ;;  %s1573_s26 = smov (!%p38_p3, %s40_s26), %s1216_s20 }
  0x19   : > { %1537 = sst [smem:[#allocation19_spill]] %s1571_s25  ;;  %p1333_p7 = por %p63_p6, %p62_p4 }
  0x1a   : > { %s103_s3 = sadd.s32 1, %s1180_s11  ;;  %p42_p8 = scmp.ge.s32.totalorder %s1573_s26, 2 }
  0x1b   : > { %p113_p9 = scmp.ne.s32.totalorder %s1180_s11, %s1176_s10  ;;  %p114_p10 = scmp.eq.s32.totalorder %s820_s22, 7 }
  0x1c   : > { %p119_p11 = scmp.ne.s32.totalorder %s1176_s10, %s1172_s9  ;;  %s1575_s26 = smov (%p42_p8, %s1573_s26), 0 }
  0x1d   : > { %1539 = sst [smem:[#allocation20_spill]] %s1575_s26  ;;  %p1344_p12 = por %p114_p10, %p113_p9 }
  0x1e   : > { %p120_p13 = scmp.eq.s32.totalorder %s821_s23, 7  ;;  %s44_s5 = ssub.s32 %s1216_s20, %s1575_s26 }
  0x1f   : > { %s46_s6 = sor.u32 %s45_s28, %s44_s5  ;;  %p101_p0 = scmp.eq.s32.totalorder %s44_s5, 0 }
  0x20   : > { %p47_p1 = scmp.eq.s32.totalorder %s46_s6, 0  ;;  %p1350_p2 = por %p120_p13, %p119_p11 }
  0x21   : > { %s1355_s8 = scalar_select %p101_p0, %s1180_s11, %s103_s3  }
  0x22   : > { %s1358_s12 = scalar_select %p47_p1, %s1192_s14, %s49_s27  }
  0x23   : > { %1542 = sst [smem:[#allocation21_spill]] %s1355_s8  ;;  %p887_p3 = scmp.lt.s32.totalorder %s1220_s21, 8 }
  0x24   : > { %1543 = sst [smem:[#allocation22_spill]] %s1358_s12  ;;  %s1362_s22 = sand.u32 1, %s1192_s14  }
  0x25   : > { %s824_s25 = sshll.u32 %s1362_s22, 3  ;;  %s825_s23 = sshll.u32 %s1216_s20, 2 }
  0x26   : > { %s148_s28 = sadd.s32 %s1208_s18, %s825_s23  ;;  %s144_s5 = scalar_lea.vmem [#allocation6], %s824_s25 }
  0x27   : > { %s153_s6 = sshll.u32 %s144_s5, 4  ;;  %s826_s26 = sshll.u32 %s148_s28, 2  ;;  %s154_s6 = int_to_ptr.vmem [resolvable:$true] %s153_s6 }
  0x28   : > { %s1544_s0 = sld [smem:[#allocation23_spill]]  ;;  %p1372_p4 = pnand %p887_p3, %p1326_p5 }
  0x29   : > { %s141_s23 = scalar_lea.sflag [#allocation7], %s1362_s22  ;;  %s1222_s25 = smov 128  }
  0x2a   : > { %s1223_s5 = smov 64   ;;  %s1224_s28 = smov 4  }
  0x2b   : > { %p828_p6 = scmp.ge.s32.totalorder %s1220_s21, 1  ;;  %p180_p8 = scmp.lt.s32.totalorder %s1220_s21, 9 }
  0x2c   : > { %s166_s3 = scalar_lea.vmem [#allocation9], %s1362_s22  ;;  %s164_s11 = scalar_lea.sflag [#allocation10], %s1362_s22 }
  0x2d   : > { %p181_p9 = pnand %p828_p6, %p180_p8  ;;  %s175_s27 = sshll.u32 %s166_s3, 4  ;;  %s176_s27 = int_to_ptr.vmem [resolvable:$true] %s175_s27 }
  0x2e   : > { %s150_s24 = scalar_lea.hbm %s1544_s0, %s826_s26  ;;  %s827_s26 = sshll.u32 %s1216_s20, 1 }
  0x2f   : > { %s151_s12 = sshll.u32 %s150_s24, 4  ;;  %s170_s29 = sadd.s32 %s1208_s18, %s827_s26  ;;  %s152_s12 = int_to_ptr.hbm [resolvable:$true] %s151_s12 }
  0x30   : > { %879 = dma.hbm_to_vmem [thread:$0]  (!%p1372_p4), %s152_s12, 128, %s154_s6, %s141_s23, %s1222_s25, %s1223_s5, %s1224_s28  }
  0x31   : > { %s171_s24 = scalar_lea.hbm %s1524_s1, %s170_s29  ;;  %184 = sbr.rel (%p181_p9) target bundleno = 1464 (0x5b8), region = 28 }
  0x32   : > { %s173_s8 = sshll.u32 %s171_s24, 4  ;;  %s186_s12 = sand.u32 (!%p181_p9), 1, %s1188_s13   ;;  %s174_s8 = int_to_ptr.hbm [resolvable:$true] %s173_s8 }
  0x33   : > { %882 = dma.hbm_to_vmem [thread:$0]  (!%p1372_p4), %s174_s8, 16, %s176_s27, %s164_s11  }
  0x34   : > { %s829_s6 = sshll.u32 (!%p181_p9), %s186_s12, 3  ;;  %s187_s23 = scalar_lea.sflag (!%p181_p9), [#allocation7], %s186_s12 }
  0x35   : > { %s1391_s25 = scalar_lea.vmem (!%p181_p9), [#allocation6], %s829_s6 }
  0x36   : > { %1159 = dma.done.wait (%p1333_p7), %s187_s23, 128  }
  0x37   : > { %1161 = vsyncadd (%p1333_p7), %s187_s23, 4294967168  ;;  %s197_s0 = scalar_lea.sflag [#allocation10], %s186_s12  ;;  %s199_s14 = scalar_lea.vmem [#allocation9], %s186_s12 }
  0x38   : > { %1163 = dma.done.wait (%p1333_p7), %s197_s0, 16  }
  0x39   : > { %1165 = vsyncadd (%p1333_p7), %s197_s0, 4294967280  ;;  %s222_s11 = sand.u32 1, %s1176_s10   ;;  %p231_p5 = scmp.eq.s32.totalorder %s1200_s16, 0  ;;  %v227_v0 = vlaneseq  ;;  %v1409_v2 = vld [vmem:[%s199_s14] ss:$0 sm:$0xff] }
  0x3a   : > { %p232_p10 = scmp.eq.s32.totalorder %s1196_s15, 0  ;;  %s1415_s19 = scalar_lea.vmem [#allocation11], %s222_s11 }
  0x3b   : > { %v1407_v1 = vshrl.u32 %v227_v0, 7 }
  0x3c   : > { %p233_p11 = pnand %p232_p10, %p231_p5 }
  0x3d   : > { %vm230_vm0 = vcmp.eq.s32.totalorder %v1409_v2, %v1407_v1  ;;  %s1226_s30 = smov (!%p233_p11), 0.0  }
  0x3e   : > { %236 = sbr.rel (%p233_p11) target bundleno = 71 (0x47), region = 40  ;;  %243 = sst [smem:[#allocation5]] (!%p233_p11), %s1226_s30 }
  0x43   : > { %vm237_vm1 = vcmask 64512   ;;  %vm240_vm2 = vcmask 57344   ;;  %v1225_v3 = vmov 0.0  }
  0x44   : > { %238 = vst.msk [vmem:[#allocation2] sm:$0xff] %vm237_vm1, %v1225_v3 }
  0x45   : > { %239 = vst.msk [vmem:[#allocation2 + $0x8] sm:$0xff] %vm237_vm1, %v1225_v3 }
  0x46   : > { %241 = vst.msk [vmem:[#allocation3] sm:$0x1] %vm240_vm2, %v1225_v3 }
  0x47 PF: > { %p830_p7 = scmp.ne.s32.totalorder %s1200_s16, 0 }
  0x49   : > { %246 = sbr.rel (%p830_p7) target bundleno = 223 (0xdf), region = 44 }
  0x4e   : > { %vm836_vm3 = vmpackc.low %vm230_vm0, %vm230_vm0  ;;  %v1227_v4 = vmov 1.0|1.0   ;;  %v853_v5 = vld [vmem:[%s1391_s25] sm:$0xff]  ;;  %v1228_v6 = vmov 1065369472   ;;  %vm276_vm4 = vcmask 64512  }
  0x4f   : > { %837 = vmatpush.bf16.xpose.msk.msra.mxu0 %vm836_vm3, %v1227_v4  ;;  %839 = vmatpush.bf16.xpose.msk.msra.mxu1 %vm836_vm3, %v1227_v4  ;;  %v252_v7 = vld [vmem:[#allocation2] sm:$0xff]  ;;  %v279_v8 = vld [vmem:[#allocation3] sm:$0x1]  ;;  %vm294_vm5 = vcmask 57344   ;;  %v253_v13 = vld [vmem:[#allocation2 + $0x8] sm:$0xff] }
  0x56   : > { %268 = vmatmul.bf16.vlgmr.msra.gmra.mxu0 %v853_v5  ;;  %288 = vmatmul.bf16.vlgmr.msra.gmra.mxu1 %v1228_v6 }
  0xd3   : > { %v269_v9 = vpop.f32.mrf.mxu0  ;;  %v289_v10 = vpop.f32.mrf.mxu1 }
  0xd4   : > { %v274_v11 = vadd.f32 %v269_v9, %v252_v7  ;;  %v293_v12 = vadd.f32 %v289_v10, %v279_v8 }
  0xd6   : > { %277 = vst.msk [vmem:[#allocation2] sm:$0xff] %vm276_vm4, %v274_v11 }
  0xd7   : > { %295 = vst.msk [vmem:[#allocation3] sm:$0x1] %vm294_vm5, %v293_v12 }
  0xdb   : > { %v271_v14 = vpop.f32.mrf.mxu0  ;;  %v291_v15 = vpop.f32.mrf.mxu1 }
  0xdc   : > { %v275_v16 = vadd.f32 %v271_v14, %v253_v13 }
  0xde   : > { %278 = vst.msk [vmem:[#allocation2 + $0x8] sm:$0xff] %vm276_vm4, %v275_v16 }
  0xdf PF: > { %p296_p13 = scmp.eq.s32.totalorder %s1200_s16, 1 }
  0xe1   : > { %p297_p0 = pnand %p296_p13, %p232_p10 }
  0xe3   : > { %300 = sbr.rel (%p297_p0) target bundleno = 274 (0x112), region = 48 }
  0xe8   : > { %v303_v17 = vld [vmem:[#allocation3] sm:$0x1]  ;;  %v301_v28 = vld [vmem:[#allocation2] sm:$0xff]  ;;  %v302_v29 = vld [vmem:[#allocation2 + $0x8] sm:$0xff]  ;;  %vm324_vm10 = vcmask 64512   ;;  %vm338_vm11 = vcmask 57344  }
  0xe9   : > { %v304_v18 = vmax.f32 %v303_v17, 1.0 }
  0xeb   : > { %v306_v19 = vperm.slane %v304_v18, 0 }
  0xed   : > { %1005 = vrcp.f32 %v306_v19  ;;  %v319_v22 = vand.u32 2147483648, %v306_v19  ;;  %vm313_vm6 = vweird.f32 %v306_v19  ;;  %v317_v24 = vand.u32 2147483647, %v306_v19 }
  0xef   : > { %v320_v26 = vor.u32 1.1754944e-38, %v319_v22  ;;  %vm318_vm9 = vcmp.eq.f32.partialorder %v317_v24, 8.507059e+37 }
  0xf3   : > { %v1006_v20 = vpop.eup %1005 }
  0xf4   : > { %v309_v21 = vmul.f32 %v1006_v20, %v306_v19  ;;  %vm314_vm7 = vweird.f32 %v1006_v20 }
  0xf5   : > { %vm315_vm8 = vmor %vm313_vm6, %vm314_vm7 }
  0xf6   : > { %v310_v23 = vsub.f32 1.0, %v309_v21 }
  0xf8   : > { %v311_v25 = vmul.f32 %v1006_v20, %v310_v23 }
  0xfa   : > { %v312_v27 = vadd.f32 %v1006_v20, %v311_v25 }
  0xfc   : > { %v316_v30 = vsel %vm315_vm8, %v1006_v20, %v312_v27 }
  0xfd   : > { %v321_v31 = vsel %vm318_vm9, %v320_v26, %v316_v30 }
  0xfe   : > { %v322_v32 = vmul.f32 %v321_v31, %v301_v28  ;;  %v323_v33 = vmul.f32 %v321_v31, %v302_v29 }
 0x100   : > { %325 = vst.msk [vmem:[#allocation2] sm:$0xff] %vm324_vm10, %v322_v32  ;;  %v327_v34 = vmul.f32 %v322_v32, %v322_v32  ;;  %v328_v35 = vmul.f32 %v323_v33, %v323_v33 }
 0x101   : > { %326 = vst.msk [vmem:[#allocation2 + $0x8] sm:$0xff] %vm324_vm10, %v323_v33 }
 0x102   : > { %v329_v36 = vsel %vm324_vm10, %v327_v34, 0.0  ;;  %v330_v37 = vsel %vm324_vm10, %v328_v35, 0.0 }
 0x103   : > { %v331_v38 = vadd.f32 %v330_v37, %v329_v36 }
 0x105   : > { %v332_v39 = vrot.slane %v331_v38, 4 }
 0x107   : > { %v333_v40 = vadd.f32 %v332_v39, %v331_v38 }
 0x109   : > { %v334_v41 = vrot.slane %v333_v40, 2 }
 0x10b   : > { %v335_v42 = vadd.f32 %v334_v41, %v333_v40 }
 0x10d   : > { %v336_v43 = vrot.slane %v335_v42, 1 }
 0x10f   : > { %v337_v44 = vadd.f32 %v336_v43, %v335_v42 }
 0x111   : > { %339 = vst.msk [vmem:[#allocation4] sm:$0x1] %vm338_vm11, %v337_v44 }
 0x112 PF: > { %p840_p1 = scmp.ne.s32.totalorder %s1200_s16, 1 }
 0x113   : > { %s467_s8 = sld [smem:[#allocation5]] (!%p840_p1) }
 0x114   : > { %342 = sbr.rel (%p840_p1) target bundleno = 804 (0x324), region = 52 }
 0x119   : > { %v349_v45 = vld [vmem:[#allocation2] sm:$0xff]  ;;  %v350_v48 = vld [vmem:[#allocation2 + $0x8] sm:$0xff]  ;;  %v414_v52 = vld [vmem:[#allocation4] sm:$0x1]  ;;  %vm415_vm12 = vcmask 64512   ;;  %v1229_v54 = vmov 1.0  }
 0x11a   : > { %v855_v46 = vld [vmem:[%s1391_s25] sm:$0xff]   ;;  %351 = vxpose.xlu0.b32.start [1/2] (short) (narrow) %v349_v45, 8  ;;  %843 = vmatpush.msk.msra.mxu1 %vm230_vm0, %v1229_v54  ;;  %vm383_vm13 = vcmask 130048   ;;  %v1230_v58 = vmov 0.0  }
 0x11b   : > { %v857_v47 = vunpack.c.h.bf16 %v855_v46  ;;  %v856_v50 = vunpack.c.l.bf16 %v855_v46  ;;  %844 = vmatmul.msk.f32.vlgmr.msra.gmra.mxu1 %vm415_vm12, %v414_v52  ;;  %v841_v59 = vsel %vm230_vm0, 1.0, %v1230_v58  ;;  %vm468_vm0 = vcmask 1040384  }
 0x11d   : > { %401 = vmatpush.msra.mxu0 %v857_v47  ;;  %v440_v49 = vmul.f32 %v857_v47, %v857_v47  ;;  %v439_v51 = vmul.f32 %v856_v50, %v856_v50 }
 0x11f   : > { %402 = vmatpush.msra.mxu0 %v856_v50  ;;  %v441_v53 = vadd.f32 %v440_v49, %v439_v51 }
 0x121   : > { %v442_v56 = vrot.slane %v441_v53, 4 }
 0x122   : > { %352 = vxpose.xlu0.b32.end [2/2] (short) (narrow) %v350_v48, 8 }
 0x123   : > { %v443_v57 = vadd.f32 %v442_v56, %v441_v53 }
 0x125   : > { %v444_v62 = vrot.slane %v443_v57, 2 }
 0x127   : > { %v445_v4 = vadd.f32 %v444_v62, %v443_v57 }
 0x129   : > { %v446_v7 = vrot.slane %v445_v4, 1 }
 0x12b   : > { %v447_v10 = vadd.f32 %v446_v7, %v445_v4 }
 0x198   : > { %v436_v12 = vpop.f32.mrf.mxu1 }
 0x1be   : > { %v367_v55 = vpop.trf.xlu0 }
 0x1bf   : > { %842 = vmatmul.msk.f32.vlgmr.msra.gmra.mxu0 %vm383_vm13, %v367_v55 }
 0x23c   : > { %v404_v60 = vpop.f32.mrf.mxu0 }
 0x23d   : > { %v407_v61 = vmul.f32 %v841_v59, %v404_v60 }
 0x23f   : > { %v408_v63 = vrot.slane %v407_v61, 4 }
 0x241   : > { %v409_v3 = vadd.f32 %v408_v63, %v407_v61 }
 0x243   : > { %v410_v5 = vrot.slane %v409_v3, 2 }
 0x245   : > { %v411_v6 = vadd.f32 %v410_v5, %v409_v3 }
 0x247   : > { %v412_v8 = vrot.slane %v411_v6, 1 }
 0x249   : > { %v413_v9 = vadd.f32 %v412_v8, %v411_v6 }
 0x24b   : > { %v448_v11 = vmul.f32 2.0, %v413_v9 }
 0x24d   : > { %v449_v13 = vsub.f32 %v447_v10, %v448_v11 }
 0x24f   : > { %v450_v14 = vadd.f32 %v449_v13, %v436_v12 }
 0x251   : > { %v451_v15 = vmax.f32 %v450_v14, 0.0 }
 0x253   : > { %1007 = vrsqrt.f32 %v451_v15  ;;  %vm459_vm14 = vcmp.eq.f32.partialorder %v451_v15, inf  ;;  %v462_v22 = vand.u32 2147483648, %v451_v15  ;;  %vm461_vm15 = vcmp.eq.f32.partialorder %v451_v15, 0.0 }
 0x259   : > { %v1008_v2 = vpop.eup %1007 }
 0x25a   : > { %v453_v16 = vmul.f32 %v1008_v2, %v451_v15 }
 0x25c   : > { %v454_v17 = vmul.f32 %v1008_v2, %v453_v16 }
 0x25e   : > { %v455_v18 = vmul.f32 0.5, %v454_v17 }
 0x260   : > { %v456_v19 = vsub.f32 1.5, %v455_v18 }
 0x262   : > { %v457_v20 = vmul.f32 %v1008_v2, %v456_v19 }
 0x264   : > { %v458_v21 = vmul.f32 %v457_v20, %v451_v15 }
 0x266   : > { %v460_v23 = vsel %vm459_vm14, %v451_v15, %v458_v21 }
 0x267   : > { %v463_v24 = vsel %vm461_vm15, %v462_v22, %v460_v23 }
 0x268   : > { %v845_v25 = vadd.f32 -0.5, %v463_v24 }
 0x26a   : > { %v465_v26 = vmax.f32 %v845_v25, 0.0 }
 0x26c   : > { %v466_v27 = vmul.f32 %v465_v26, %v465_v26 }
 0x26e   : > { %v469_v28 = vsel %vm468_vm0, %v466_v27, 0.0 }
 0x26f   : > { %470 = vadd.xlane.f32.xlu1 %v469_v28 }
 0x2e2   : > { %v471_v29 = vpop.xlane.xlu1 %470 }
 0x2e3   : > { %v472_v30 = vrot.slane %v471_v29, 4 }
 0x2e5   : > { %v473_v31 = vadd.f32 %v472_v30, %v471_v29 }
 0x2e7   : > { %v474_v32 = vrot.slane %v473_v31, 2 }
 0x2e9   : > { %v475_v33 = vadd.f32 %v474_v32, %v473_v31 }
 0x2eb   : > { %v476_v34 = vrot.slane %v475_v33, 1 }
 0x2ed   : > { %v477_v35 = vadd.f32 %v476_v34, %v475_v33 }
 0x2ef   : > { %858 = vpush %v477_v35 }
 0x320   : > { %s859_s22 = spop %858 }
 0x321   : > { %s479_s5 = sadd.f32 %s859_s22, %s467_s8 }
 0x323   : > { %481 = sst [smem:[#allocation5]] %s479_s5 }
 0x324 PF: > { %p482_p3 = scmp.eq.s32.totalorder %s1196_s15, 1 }
 0x326   : > { %p483_p4 = pnand %p482_p3, %p296_p13 }
 0x327   : > { %s1232_s29 = smov (!%p483_p4), 1.0   ;;  %s693_s27 = sld [smem:[#allocation5]] (!%p483_p4) }
 0x328   : > { %486 = sbr.rel (%p483_p4) target bundleno = 1450 (0x5aa), region = 56 }
 0x32d   : > { %v487_v36 = vld [vmem:[#allocation2] sm:$0xff]  ;;  %v488_v37 = vld [vmem:[#allocation2 + $0x8] sm:$0xff]  ;;  %v1440_v38 = vand.u32 127, %v227_v0  ;;  %v492_v39 = vld [vmem:[#allocation3] sm:$0x1]  ;;  %vm496_vm2 = vcmask 57344  }
 0x32e   : > { %523 = vxpose.xlu0.b32.start [1/2] (short) (narrow) %v487_v36, 8  ;;  %vm493_vm1 = vcmp.gt.f32.partialorder %v492_v39, 0.0  ;;  %573 = vmatpush.msra.mxu0 %v488_v37  ;;  %vm555_vm4 = vcmask 130048   ;;  %v489_v60 = vld [vmem:[#allocation4] sm:$0x1]  ;;  %v1231_v4 = vmov 0.0  }
 0x32f   : > { %v494_v40 = vadd.s32 1, %v1440_v38  ;;  %v652_v61 = vmax.f32 %v489_v60, 0.0  ;;  %vm579_vm8 = vcmp.eq.s32.totalorder %v1407_v1, %v1440_v38  ;;  %vm583_vm9 = vcmask 64512   ;;  %v1009_v20 = vld [vmem:[#allocation4] ss:$0 sm:$0xff]  ;;  %s694_s0 = smul.f32 0.00390625, %s693_s27 }
 0x330   : > { %574 = vmatpush.msra.mxu0 %v487_v36  ;;  %v847_v5 = vsel %vm579_vm8, 1.0, %v1231_v4 }
 0x331   : > { %v495_v41 = vsel %vm493_vm1, %v494_v40, 0  ;;  %1010 = vrsqrt.f32 %v652_v61  ;;  %vm660_vm10 = vcmp.eq.f32.partialorder %v652_v61, inf  ;;  %v663_v13 = vand.u32 2147483648, %v652_v61 }
 0x332   : > { %v497_v42 = vsel %vm496_vm2, %v495_v41, 2147483648  ;;  %vm662_vm11 = vcmp.eq.f32.partialorder %v652_v61, 0.0  ;;  %v606_v29 = vsub.f32 1.0, %v847_v5 }
 0x333   : > { %v499_v43 = vshra.s32 %v497_v42, 16  ;;  %v498_v45 = vand.u32 65535, %v497_v42 }
 0x334   : > { %v607_v32 = vmul.f32 3.0, %v606_v29 }
 0x335   : > { %v501_v44 = vcvt.s32.f32 %v499_v43  ;;  %v500_v46 = vcvt.s32.f32 %v498_v45 }
 0x336   : > { %524 = vxpose.xlu0.b32.end [2/2] (short) (narrow) %v488_v37, 8 }
 0x337   : > { %502 = vmax.xlane.f32.xlu1 %v501_v44  ;;  %v1011_v62 = vpop.eup %1010 }
 0x338   : > { %v654_v63 = vmul.f32 %v1011_v62, %v652_v61 }
 0x33a   : > { %v655_v3 = vmul.f32 %v1011_v62, %v654_v63 }
 0x33c   : > { %v656_v7 = vmul.f32 0.5, %v655_v3 }
 0x33e   : > { %v657_v10 = vsub.f32 1.5, %v656_v7 }
 0x340   : > { %v658_v11 = vmul.f32 %v1011_v62, %v657_v10 }
 0x342   : > { %v659_v12 = vmul.f32 %v658_v11, %v652_v61 }
 0x344   : > { %v661_v14 = vsel %vm660_vm10, %v652_v61, %v659_v12 }
 0x345   : > { %v664_v2 = vsel %vm662_vm11, %v663_v13, %v661_v14 }
 0x3aa   : > { %v503_v47 = vpop.xlane.xlu1 %502 }
 0x3ab   : > { %vm504_vm3 = vcmp.eq.f32.partialorder %v501_v44, %v503_v47  ;;  %v509_v49 = vcvt.f32.s32 %v503_v47 }
 0x3ac   : > { %v505_v0 = vsel %vm504_vm3, %v500_v46, -inf }
 0x3ad   : > { %506 = vmax.xlane.f32.xlu1 %v505_v0  ;;  %v510_v50 = vshll.u32 %v509_v49, 16 }
 0x3d2   : > { %v539_v48 = vpop.trf.xlu0 }
 0x3d3   : > { %846 = vmatmul.msk.f32.vlgmr.msra.gmra.mxu0 %vm555_vm4, %v539_v48 }
 0x420   : > { %v507_v51 = vpop.xlane.xlu1 %506 }
 0x421   : > { %v508_v52 = vcvt.f32.s32 %v507_v51 }
 0x423   : > { %v511_v53 = vadd.s32 %v510_v50, %v508_v52 }
 0x425   : > { %v512_v54 = vrot.slane %v511_v53, 4 }
 0x427   : > { %vm513_vm5 = vcmp.gt.s32.totalorder %v511_v53, %v512_v54 }
 0x428   : > { %v514_v55 = vsel %vm513_vm5, %v511_v53, %v512_v54 }
 0x429   : > { %v515_v56 = vrot.slane %v514_v55, 2 }
 0x42b   : > { %vm516_vm6 = vcmp.gt.s32.totalorder %v514_v55, %v515_v56 }
 0x42c   : > { %v517_v57 = vsel %vm516_vm6, %v514_v55, %v515_v56 }
 0x42d   : > { %v518_v58 = vrot.slane %v517_v57, 1 }
 0x42f   : > { %vm519_vm7 = vcmp.gt.s32.totalorder %v517_v57, %v518_v58 }
 0x430   : > { %v520_v59 = vsel %vm519_vm7, %v517_v57, %v518_v58 }
 0x431   : > { %860 = vpush %v520_v59 }
 0x450   : > { %v576_v6 = vpop.f32.mrf.mxu0 }
 0x451   : > { %v582_v8 = vmul.f32 %v847_v5, %v576_v6  ;;  %v591_v22 = vmul.f32 2.0, %v576_v6 }
 0x453   : > { %v584_v9 = vsel %vm583_vm9, %v582_v8, 0.0 }
 0x454   : > { %585 = vadd.xlane.f32.xlu2 %v584_v9 }
 0x462   : > { %s1447_s15 = spop %860 }
 0x463   : > { %v608_v15 = vstv %s1447_s15  ;;  %s522_s16 = scvt.s32.f32 %s1447_s15  ;;  %p621_p6 = scmp.gt.s32.totalorder %s1447_s15, 1 }
 0x464   : > { %vm609_vm12 = vcmp.lt.s32.totalorder %v1407_v1, %v608_v15  ;;  %vm610_vm13 = vcmp.lt.s32.totalorder %v1440_v38, %v608_v15 }
 0x465   : > { %v850_v16 = vsel %vm610_vm13, 1.0, %v1231_v4  ;;  %vm611_vm14 = vmand %vm609_vm12, %vm610_vm13  ;;  %s849_s28 = sadd.f32 -1.0, %s522_s16  ;;  %v676_v43 = vstv %s522_s16 }
 0x466   : > { %v665_v17 = vmul.f32 %v850_v16, %v664_v2  ;;  %v848_v18 = vsel %vm611_vm14, 1.0, %v1231_v4  ;;  %v688_v6 = vand.u32 2147483648, %v676_v43  ;;  %vm682_vm5 = vweird.f32 %v676_v43 }
 0x467   : > { %s619_s26 = smul.f32 %s849_s28, %s522_s16  ;;  %v686_v8 = vand.u32 2147483647, %v676_v43 }
 0x468   : > { %v666_v19 = vsel %vm496_vm2, %v665_v17, 0.0  ;;  %v689_v14 = vor.u32 1.1754944e-38, %v688_v6 }
 0x469   : > { %667 = vadd.xlane.f32.xlu0 %v666_v19  ;;  %s620_s3 = smax.f32 %s1232_s29, %s619_s26  ;;  %vm687_vm8 = vcmp.eq.f32.partialorder %v686_v8, 8.507059e+37 }
 0x46a   : > { %v632_v42 = vstv %s620_s3 }
 0x46b   : > { %v644_v62 = vand.u32 2147483648, %v632_v42  ;;  %vm638_vm2 = vweird.f32 %v632_v42  ;;  %v642_v63 = vand.u32 2147483647, %v632_v42 }
 0x46d   : > { %v645_v10 = vor.u32 1.1754944e-38, %v644_v62  ;;  %vm643_vm7 = vcmp.eq.f32.partialorder %v642_v63, 8.507059e+37 }
 0x4c7   : > { %v586_v21 = vpop.xlane.xlu2 %585 }
 0x4c8   : > { %v590_v23 = vadd.f32 %v1009_v20, %v586_v21 }
 0x4ca   : > { %v592_v24 = vsub.f32 %v590_v23, %v591_v22 }
 0x4cc   : > { %v593_v25 = vmax.f32 %v592_v24, 0.0 }
 0x4ce   : > { %1012 = vrsqrt.f32 %v593_v25  ;;  %vm601_vm15 = vcmp.eq.f32.partialorder %v593_v25, inf  ;;  %v604_v34 = vand.u32 2147483648, %v593_v25  ;;  %vm603_vm0 = vcmp.eq.f32.partialorder %v593_v25, 0.0 }
 0x4cf   : > { %1014 = vrcp.f32 %v632_v42 }
 0x4d0   : > { %1016 = vrcp.f32 %v676_v43 }
 0x4d4   : > { %v1013_v26 = vpop.eup %1012 }
 0x4d5   : > { %v595_v27 = vmul.f32 %v1013_v26, %v593_v25  ;;  %v1015_v45 = vpop.eup %1014 }
 0x4d6   : > { %v1017_v46 = vpop.eup %1016  ;;  %v634_v0 = vmul.f32 %v1015_v45, %v632_v42  ;;  %vm639_vm1 = vweird.f32 %v1015_v45 }
 0x4d7   : > { %v596_v28 = vmul.f32 %v1013_v26, %v595_v27  ;;  %v678_v48 = vmul.f32 %v1017_v46, %v676_v43  ;;  %vm683_vm3 = vweird.f32 %v1017_v46  ;;  %vm640_vm4 = vmor %vm638_vm2, %vm639_vm1 }
 0x4d8   : > { %v635_v50 = vsub.f32 1.0, %v634_v0  ;;  %vm684_vm6 = vmor %vm682_vm5, %vm683_vm3 }
 0x4d9   : > { %v597_v1 = vmul.f32 0.5, %v596_v28  ;;  %v679_v52 = vsub.f32 1.0, %v678_v48 }
 0x4da   : > { %v636_v55 = vmul.f32 %v1015_v45, %v635_v50 }
 0x4db   : > { %v598_v30 = vsub.f32 1.5, %v597_v1  ;;  %v680_v57 = vmul.f32 %v1017_v46, %v679_v52 }
 0x4dc   : > { %v668_v44 = vpop.xlane.xlu0 %667  ;;  %v637_v60 = vadd.f32 %v1015_v45, %v636_v55 }
 0x4dd   : > { %v599_v31 = vmul.f32 %v1013_v26, %v598_v30  ;;  %v669_v47 = vrot.slane %v668_v44, 4  ;;  %v681_v3 = vadd.f32 %v1017_v46, %v680_v57 }
 0x4de   : > { %v641_v7 = vsel %vm640_vm4, %v1015_v45, %v637_v60 }
 0x4df   : > { %v600_v33 = vmul.f32 %v599_v31, %v593_v25  ;;  %v670_v49 = vadd.f32 %v669_v47, %v668_v44  ;;  %v685_v11 = vsel %vm684_vm6, %v1017_v46, %v681_v3  ;;  %v646_v12 = vsel %vm643_vm7, %v645_v10, %v641_v7 }
 0x4e0   : > { %v690_v15 = vsel %vm687_vm8, %v689_v14, %v685_v11 }
 0x4e1   : > { %v602_v35 = vsel %vm601_vm15, %v593_v25, %v600_v33  ;;  %v671_v53 = vrot.slane %v670_v49, 2 }
 0x4e2   : > { %v605_v36 = vsel %vm603_vm0, %v604_v34, %v602_v35 }
 0x4e3   : > { %v614_v37 = vsub.f32 %v607_v32, %v605_v36  ;;  %v672_v58 = vadd.f32 %v671_v53, %v670_v49 }
 0x4e5   : > { %v615_v38 = vmax.f32 %v614_v37, 0.0  ;;  %v673_v5 = vrot.slane %v672_v58, 1 }
 0x4e7   : > { %v616_v39 = vmul.f32 %v615_v38, %v615_v38  ;;  %v674_v13 = vadd.f32 %v673_v5, %v672_v58 }
 0x4e9   : > { %v617_v40 = vmul.f32 %v848_v18, %v616_v39 }
 0x4eb   : > { %v622_v41 = vsel %vm583_vm9, %v617_v40, 0.0 }
 0x4ec   : > { %623 = vadd.xlane.f32.xlu2 %v622_v41 }
 0x55f   : > { %v624_v51 = vpop.xlane.xlu2 %623 }
 0x560   : > { %v625_v54 = vrot.slane %v624_v51, 4 }
 0x562   : > { %v626_v56 = vadd.f32 %v625_v54, %v624_v51 }
 0x564   : > { %v627_v59 = vrot.slane %v626_v56, 2 }
 0x566   : > { %v628_v61 = vadd.f32 %v627_v59, %v626_v56 }
 0x568   : > { %v629_v4 = vrot.slane %v628_v61, 1 }
 0x56a   : > { %v630_v9 = vadd.f32 %v629_v4, %v628_v61 }
 0x56c   : > { %862 = vpush %v630_v9 }
 0x56d   : > { %864 = vpush %v646_v12 }
 0x56e   : > { %866 = vpush %v674_v13 }
 0x56f   : > { %868 = vpush %v690_v15 }
 0x59d   : > { %s863_s24 = spop %862 }
 0x59e   : > { %s865_s12 = spop %864 }
 0x59f   : > { %s648_s6 = smul.f32 %s865_s12, %s863_s24  ;;  %s867_s23 = spop %866 }
 0x5a0   : > { %s869_s25 = spop %868 }
 0x5a1   : > { %s1577_s6 = smov (!%p621_p6, %s648_s6), 0.0  ;;  %s692_s14 = smul.f32 %s869_s25, %s867_s23 }
 0x5a2   : > { %s695_s30 = smul.f32 0.5, %s1577_s6 }
 0x5a3   : > { %s697_s22 = smul.f32 0.0005, %s692_s14 }
 0x5a4   : > { %s696_s8 = sadd.f32 %s695_s30, %s694_s0 }
 0x5a6   : > { %s698_s5 = sadd.f32 %s697_s22, %s696_s8 }
 0x5a8   : > { %v699_v2 = vstv %s698_s5 }
 0x5a9   : > { %700 = vst [vmem:[%s1415_s19] sm:$0x1] %v699_v2 }
 0x5aa PF: > { %s710_s15 = scalar_lea.hbm %s1525_s2, %s1204_s17  ;;  %s712_s26 = sshll.u32 %s1415_s19, 4  ;;  %s713_s26 = int_to_ptr.vmem [resolvable:$true] %s712_s26 }
 0x5ab   : > { %s714_s29 = sshll.u32 %s710_s15, 4  ;;  %s702_s3 = scalar_lea.sflag [#allocation8], %s222_s11  ;;  %s715_s29 = int_to_ptr.hbm [resolvable:$true] %s714_s29 }
 0x5ac   : > { %s1092_s27 = sshra.s32 %s715_s29, 4  ;;  %s1098_s23 = scalar_lea.hbm %s1525_s2, 2  ;;  %s1093_s27 = int_to_ptr.hbm [resolvable:$true] %s1092_s27 }
 0x5ad   : > { %s1094_s24 = scalar_lea.hbm %s1093_s27, 1  ;;  %p1099_p10 = scmp.lt.s32.totalorder %s1093_s27, %s1525_s2 }
 0x5ae   : > { %p1095_p8 = scmp.ne.s32.totalorder %s1093_s27, %s1094_s24  ;;  %p1100_p11 = scmp.lt.s32.totalorder %s1098_s23, %s1094_s24 }
 0x5b0   : > { %p1096_p9 = pnand %p1095_p8, %p1344_p12  ;;  %p1101_p7 = por %p1100_p11, %p1099_p10 }
 0x5b2   : > { %p1097_p5 = pneg %p1096_p9 }
 0x5b4   : > { %p1102_p13 = pnand %p1101_p7, %p1097_p5 }
 0x5b6   : > { %1105 = shalt.err (!%p1102_p13)
}
 0x5b7   : > { %874 = dma.vmem_to_hbm [thread:$0]  (%p1344_p12), %s713_s26, 16, %s715_s29, %s702_s3  }
 0x5b8 PF: > { %p888_p0 = scmp.ge.s32.totalorder %s1220_s21, 2  ;;  %s726_s17 = sand.u32 1, %s1172_s9  }
 0x5b9   : > { %s727_s11 = scalar_lea.sflag [#allocation8], %s726_s17 }
 0x5ba   : > { %p884_p1 = pnand %p888_p0, %p1350_p2 }
 0x5bc   : > { %p885_p3 = pneg %p884_p1 }
 0x5be   : > { %1167 = dma.done.wait (%p885_p3), %s727_s11, 16  }
 0x5bf   : > { %1169 = vsyncadd (%p885_p3), %s727_s11, 4294967280  ;;  %s21_s21 = sadd.s32 1, %s1220_s21   ;;  %s1547_s4 = sld [smem:[#allocation15_spill]] }
 0x5c0   : > { %p1479_p4 = scmp.ge.s32.totalorder %s21_s21, 10   ;;  %s1548_s11 = sld [smem:[#allocation21_spill]] }
 0x5c1   : > { %s1549_s14 = sld [smem:[#allocation16_spill]]  ;;  %s1556_s9 = smov %s1176_s10 }
 0x5c2   : > { %s1550_s30 = sld [smem:[#allocation22_spill]]  ;;  %s1558_s12 = smov %s1188_s13 }
 0x5c3   : > { %s1551_s16 = sld [smem:[#allocation17_spill]]  ;;  %s1561_s15 = smov %s1208_s18 }
 0x5c4   : > { %s1552_s7 = sld [smem:[#allocation18_spill]]  ;;  %s1562_s17 = smov %s1216_s20 }
 0x5c5   : > { %s1553_s8 = sld [smem:[#allocation19_spill]]  ;;  %s1557_s10 = smov %s1547_s4 }
 0x5c6   : > { %s1554_s22 = sld [smem:[#allocation20_spill]] }
 0x5c7   : > { %s1559_s13 = smov %s1549_s14 }
 0x5c8   : > { %s1560_s14 = smov %s1550_s30  ;;  %20 = sbr.rel (!%p1479_p4) target bundleno = 14 (0xe), region = 108 }
 0x5ca   : > { %s1563_s18 = smov %s1552_s7 }
 0x5cb   : > { %s1564_s19 = smov %s1553_s8 }
 0x5cc   : > { %s1565_s20 = smov %s1554_s22 }
 0x5cd   :  { %732 = vsyncpa [#allocation7], 1 }
 0x5ce   :  { %734 = vsyncpa [#allocation7 + $0x1], 1 }
 0x5cf   :  { %735 = vsyncpa [#allocation10], 1 }
 0x5d0   :  { %737 = vsyncpa [#allocation10 + $0x1], 1 }
 0x5d1   :  { %738 = vsyncpa [#allocation8], 1 }
 0x5d2   :  { %740 = vsyncpa [#allocation8 + $0x1], 1 }

</bundles_post_ra>
